<compile_context>
chip_gen: v6e
topology: v6e:2x2x1
jax: 0.10.0
libtpu: 0.0.40
codegen_flags: <defaults>
</compile_context>

<pallas_src>
import math
import jax
import jax.numpy as jnp
from jax.experimental import pallas as pl
from jax.experimental.pallas import tpu as pltpu


def _pair(v):
    return (v, v) if isinstance(v, int) else tuple(v)


def _make_pad_kernel(pad_top, pad_bottom, pad_left, pad_right, H, W):
    """Kernel: interior store + thin zero border strips (each byte written once)."""
    H_out = H + pad_top + pad_bottom
    W_out = W + pad_left + pad_right

    def pad_kernel(x_ref, o_ref):
        bc = o_ref.shape[0]
        dtype = o_ref.dtype

        # Thin zero borders: top/bottom strips span the full width; left/right
        # strips cover only the interior rows, so no element is written twice.
        if pad_top:
            o_ref[:, :pad_top, :] = jnp.zeros((bc, pad_top, W_out), dtype)
        if pad_bottom:
            o_ref[:, H_out - pad_bottom:, :] = jnp.zeros((bc, pad_bottom, W_out), dtype)
        if pad_left:
            o_ref[:, pad_top:pad_top + H, :pad_left] = jnp.zeros((bc, H, pad_left), dtype)
        if pad_right:
            o_ref[:, pad_top:pad_top + H, W_out - pad_right:] = jnp.zeros((bc, H, pad_right), dtype)

        # Interior: one store of the input block at its (static) offset.
        if pad_top or pad_bottom or pad_left or pad_right:
            o_ref[:, pad_top:pad_top + H, pad_left:pad_left + W] = x_ref[...]
        else:
            o_ref[...] = x_ref[...]

    return pad_kernel


def _mosaic_padded_tile_bytes(h, w, itemsize):
    """Real VMEM footprint of an (..., h, w) tile after Mosaic (sublane, lane) padding."""
    sublane_mult = max(8, 32 // itemsize)   # 8 for f32, 16 for bf16, 32 for int8
    lane_mult = 128
    hp = -(-h // sublane_mult) * sublane_mult
    wp = -(-w // lane_mult) * lane_mult
    return hp * wp * itemsize


def same_pad_2d(x, kernel_size, stride):
    """Exact reimplementation of SamePad2d.forward for NCHW input `x`."""
    kernel_size = _pair(kernel_size)
    stride = _pair(stride)
    N, C, d2, d3 = x.shape

    # Mirror the PyTorch module's arithmetic exactly (including its
    # width/height swap quirk — see module docstring above).
    in_width = d2
    in_height = d3
    out_width = math.ceil(float(in_width) / float(stride[0]))
    out_height = math.ceil(float(in_height) / float(stride[1]))
    pad_along_width = (out_width - 1) * stride[0] + kernel_size[0] - in_width
    pad_along_height = (out_height - 1) * stride[1] + kernel_size[1] - in_height
    pad_left = int(math.floor(pad_along_width / 2))
    pad_top = int(math.floor(pad_along_height / 2))
    pad_right = int(pad_along_width - pad_left)
    pad_bottom = int(pad_along_height - pad_top)

    # F.pad(input, (pad_left, pad_right, pad_top, pad_bottom)):
    #   dim 3 (last) gets (pad_left, pad_right); dim 2 gets (pad_top, pad_bottom)
    assert min(pad_left, pad_right, pad_top, pad_bottom) >= 0, \
        "negative SAME padding (crop) not supported"  # TODO(synk): negative pad == crop

    H, W = d2, d3
    H_out = H + pad_top + pad_bottom
    W_out = W + pad_left + pad_right

    # N and C are pure batch dims for a pad — flatten them (free reshape) and
    # block over the flattened axis so each grid step moves MiB-scale data.
    NC = N * C
    x2 = x.reshape(NC, H, W)

    itemsize = jnp.dtype(x.dtype).itemsize

    # Real (tile-padded) per-NC-row footprint in VMEM, for input and output
    # blocks.  Both are double-buffered by the pipeline.
    in_row = _mosaic_padded_tile_bytes(H, W, itemsize)
    out_row = _mosaic_padded_tile_bytes(H_out, W_out, itemsize)
    per_row_pipelined = 2 * (in_row + out_row)   # 2-deep buffering of in + out

    try:
        vmem_bytes = int(pltpu.get_tpu_info().vmem_capacity_bytes)
    except Exception:
        vmem_bytes = 64 * 1024 * 1024            # conservative fallback (v7x per-TC)
    vmem_limit = (vmem_bytes * 3) // 4           # ~75% of capacity for this kernel
    tile_budget = (vmem_limit * 17) // 20        # ~85% of that for pipeline buffers

    bc_max = max(1, tile_budget // per_row_pipelined)
    bc_max = min(bc_max, NC)

    # Aim for >= ~8 evenly-split grid steps (>= 4 per TensorCore on v7x) so
    # DMA-in of step i+1 overlaps DMA-out of step i-1 and both cores stay
    # balanced — but never shrink blocks below ~2 MiB of real footprint.
    min_rows = max(1, (2 * 1024 * 1024) // (in_row + out_row))
    target_bc = max(min_rows, pl.cdiv(NC, 8))
    bc = max(1, min(bc_max, target_bc))
    # Round bc down to a divisor of NC: no ragged masked tail block.
    while NC % bc:
        bc -= 1
    grid = (NC // bc,)

    kernel = _make_pad_kernel(pad_top, pad_bottom, pad_left, pad_right, H, W)
    bytes_accessed = (NC * H * W + NC * H_out * W_out) * itemsize

    out2 = pl.pallas_call(
        kernel,
        out_shape=jax.ShapeDtypeStruct((NC, H_out, W_out), x.dtype),
        grid_spec=pltpu.PrefetchScalarGridSpec(
            num_scalar_prefetch=0,
            grid=grid,
            in_specs=[pl.BlockSpec((bc, H, W), lambda i: (i, 0, 0))],
            out_specs=pl.BlockSpec((bc, H_out, W_out), lambda i: (i, 0, 0)),
        ),
        compiler_params=pltpu.CompilerParams(
            dimension_semantics=("parallel",),
            vmem_limit_bytes=int(vmem_limit),
        ),
        cost_estimate=pl.CostEstimate(
            flops=0, transcendentals=0, bytes_accessed=bytes_accessed),
    )(x2)
    return out2.reshape(N, C, H_out, W_out)


if __name__ == "__main__":
    key = jax.random.PRNGKey(0)
    x = jax.random.normal(key, (2, 4, 16, 16), dtype=jnp.float32)

    # SamePad2d(kernel_size=3, stride=1) — the common Mask R-CNN configuration.
    y = same_pad_2d(x, 3, 1)
    y = jax.block_until_ready(y)
    ref = jnp.pad(x, ((0, 0), (0, 0), (1, 1), (1, 1)))
    assert y.shape == (2, 4, 18, 18), y.shape
    assert jnp.allclose(y, ref), "mismatch vs reference padding (k=3, s=1)"

    # SamePad2d(kernel_size=3, stride=2) — asymmetric (right/bottom-only) pads.
    y2 = same_pad_2d(x, 3, 2)
    y2 = jax.block_until_ready(y2)
    ref2 = jnp.pad(x, ((0, 0), (0, 0), (0, 1), (0, 1)))
    assert y2.shape == (2, 4, 17, 17), y2.shape
    assert jnp.allclose(y2, ref2), "mismatch vs reference padding (k=3, s=2)"

    # No-pad case (kernel_size=1, stride=1) — pure copy path.
    y3 = same_pad_2d(x, 1, 1)
    y3 = jax.block_until_ready(y3)
    assert y3.shape == x.shape and jnp.allclose(y3, x), "mismatch (k=1, s=1)"

    print("KERNEL_OK")
</pallas_src>

<mosaic_0001>
module attributes {stable_mosaic.version = 11 : i64} {
  func.func @pad_kernel(%arg0: i32, %arg1: memref<8x16x16xf32, #tpu.memory_space<vmem>>, %arg2: memref<8x18x18xf32, #tpu.memory_space<vmem>>) attributes {dimension_semantics = [#tpu.dimension_semantics<parallel>], iteration_bounds = array<i64: 1>, scalar_prefetch = 0 : i64, scratch_operands = 0 : i64, tpu.core_type = #tpu.core_type<tc>, window_params = [{transform_indices = @transform_0, window_bounds = array<i64: 8, 16, 16>}, {transform_indices = @transform_1, window_bounds = array<i64: 8, 18, 18>}]} {
    %cst = arith.constant 0.000000e+00 : f32
    %0 = vector.broadcast %cst : f32 to vector<8x1x18xf32>
    %c0 = arith.constant 0 : index
    %c0_0 = arith.constant 0 : index
    %c0_1 = arith.constant 0 : index
    %1 = vector.load %arg2[%c0, %c0_0, %c0_1] : memref<8x18x18xf32, #tpu.memory_space<vmem>>, vector<8x1x18xf32>
    tpu.vector_store %arg2[%c0, %c0_0, %c0_1], %0 {strides = array<i32>} : memref<8x18x18xf32, #tpu.memory_space<vmem>>, vector<8x1x18xf32>,
    %cst_2 = arith.constant 0.000000e+00 : f32
    %2 = vector.broadcast %cst_2 : f32 to vector<8x1x18xf32>
    %c0_3 = arith.constant 0 : index
    %c17 = arith.constant 17 : index
    %c0_4 = arith.constant 0 : index
    %3 = vector.load %arg2[%c0_3, %c17, %c0_4] : memref<8x18x18xf32, #tpu.memory_space<vmem>>, vector<8x1x18xf32>
    tpu.vector_store %arg2[%c0_3, %c17, %c0_4], %2 {strides = array<i32>} : memref<8x18x18xf32, #tpu.memory_space<vmem>>, vector<8x1x18xf32>,
    %cst_5 = arith.constant 0.000000e+00 : f32
    %4 = vector.broadcast %cst_5 : f32 to vector<8x16x1xf32>
    %c0_6 = arith.constant 0 : index
    %c1 = arith.constant 1 : index
    %c0_7 = arith.constant 0 : index
    %5 = vector.load %arg2[%c0_6, %c1, %c0_7] : memref<8x18x18xf32, #tpu.memory_space<vmem>>, vector<8x16x1xf32>
    tpu.vector_store %arg2[%c0_6, %c1, %c0_7], %4 {strides = array<i32>} : memref<8x18x18xf32, #tpu.memory_space<vmem>>, vector<8x16x1xf32>,
    %cst_8 = arith.constant 0.000000e+00 : f32
    %6 = vector.broadcast %cst_8 : f32 to vector<8x16x1xf32>
    %c0_9 = arith.constant 0 : index
    %c1_10 = arith.constant 1 : index
    %c17_11 = arith.constant 17 : index
    %7 = vector.load %arg2[%c0_9, %c1_10, %c17_11] : memref<8x18x18xf32, #tpu.memory_space<vmem>>, vector<8x16x1xf32>
    tpu.vector_store %arg2[%c0_9, %c1_10, %c17_11], %6 {strides = array<i32>} : memref<8x18x18xf32, #tpu.memory_space<vmem>>, vector<8x16x1xf32>,
    %c0_12 = arith.constant 0 : index
    %c0_13 = arith.constant 0 : index
    %c0_14 = arith.constant 0 : index
    %8 = vector.load %arg1[%c0_12, %c0_13, %c0_14] : memref<8x16x16xf32, #tpu.memory_space<vmem>>, vector<8x16x16xf32>
    %c0_15 = arith.constant 0 : index
    %c1_16 = arith.constant 1 : index
    %c1_17 = arith.constant 1 : index
    %9 = vector.load %arg2[%c0_15, %c1_16, %c1_17] : memref<8x18x18xf32, #tpu.memory_space<vmem>>, vector<8x16x16xf32>
    tpu.vector_store %arg2[%c0_15, %c1_16, %c1_17], %8 {strides = array<i32>} : memref<8x18x18xf32, #tpu.memory_space<vmem>>, vector<8x16x16xf32>,
    return
  }
  func.func @transform_0(%arg0: i32) -> (i32, i32, i32) {
    %c0_i32 = arith.constant 0 : i32
    %c0_i32_0 = arith.constant 0 : i32
    %c0_i32_1 = arith.constant 0 : i32
    return %arg0, %c0_i32, %c0_i32_0 : i32, i32, i32
  }
  func.func @transform_1(%arg0: i32) -> (i32, i32, i32) {
    %c0_i32 = arith.constant 0 : i32
    %c0_i32_0 = arith.constant 0 : i32
    %c0_i32_1 = arith.constant 0 : i32
    return %arg0, %c0_i32, %c0_i32_0 : i32, i32, i32
  }
}

</mosaic_0001>

<bundles_post_ra>
// kernel: tpu_custom_call.1
= control target key start
LH: loop header
LB: loop body
LE: loop exit
PB: predicated region body
PF: predicated region fallthrough
CT: control target
= control target key end

     0   :  { %6 = vsyncpa [#allocation3], 0  ;;  %s202_s6 = smov [#allocation2]   ;;  %s476_s0 = inlined_call_operand.hbm [shape: f32[8,16,16], index: 0, kind: input, shape index: {}]   ;;  %s477_s1 = inlined_call_operand.vmem [shape: f32[8,18,18], index: 1, kind: output, shape index: {}]  }
   0x1   :  { %s12_s7 = sshll.u32 %s202_s6, 4  ;;  %s13_s7 = int_to_ptr.vmem [resolvable:$true] %s12_s7 }
   0x2   :  { %s188_s8 = scalar_lea.vmem %s13_s7, 2048  ;;  %p193_p1 = scmp.lt.s32.totalorder %s13_s7, %s13_s7 }
   0x3   :  { %p189_p0 = scmp.ne.s32.totalorder %s13_s7, %s188_s8  ;;  %p194_p2 = scmp.lt.s32.totalorder %s188_s8, %s188_s8 }
   0x5   :  { %p195_p3 = por %p194_p2, %p193_p1 }
   0x7   :  { %p196_p4 = pnand %p195_p3, %p189_p0 }
   0x9   :  { %199 = shalt.err (!%p196_p4)
}
   0xa   :  { %s203_s9 = smov 128   ;;  %s204_s10 = smov 8  }
   0xb   :  { %18 = dma.hbm_to_vmem [thread:$0]  %s476_s0, 2048, %s13_s7, [#allocation3], %s203_s9, %s203_s9, %s204_s10  }
   0xc   :  { %200 = dma.done.wait [#allocation3], 2048  }
   0xd   :  { %201 = vsyncadd [#allocation3], 4294965248  ;;  %vm22_vm0 = vcmask 139264   ;;  %vm39_vm1 = vcmask 7168   ;;  %v205_v0 = vmov 0.0   ;;  %vm56_vm2 = vcmask 146568  }
   0xe   :  { %23 = vst.msk [vmem:[%s477_s1] sm:$0x1] %vm22_vm0, %v205_v0  ;;  %24 = vst.msk [vmem:[%s477_s1 + $0x18] sm:$0x1] %vm22_vm0, %v205_v0  ;;  %v75_v1 = vld [vmem:[#allocation2 + $0x10] sm:$0xff]  ;;  %v73_v2 = vld [vmem:[#allocation2] sm:$0xff] }
   0xf   :  { %25 = vst.msk [vmem:[%s477_s1 + $0x30] sm:$0x1] %vm22_vm0, %v205_v0  ;;  %26 = vst.msk [vmem:[%s477_s1 + $0x48] sm:$0x1] %vm22_vm0, %v205_v0  ;;  %s206_s0 = smov 1   ;;  %v76_v3 = vld [vmem:[#allocation2 + $0x18] sm:$0xff] }
  0x10   :  { %27 = vst.msk [vmem:[%s477_s1 + $0x60] sm:$0x1] %vm22_vm0, %v205_v0  ;;  %28 = vst.msk [vmem:[%s477_s1 + $0x78] sm:$0x1] %vm22_vm0, %v205_v0  ;;  %109 = vrot.lane.b32.xlu1 %v75_v1, %s206_s0  ;;  %105 = vrot.lane.b32.xlu0 %v73_v2, %s206_s0  ;;  %v74_v4 = vld [vmem:[#allocation2 + $0x8] sm:$0xff]  ;;  %v77_v6 = vld [vmem:[#allocation2 + $0x20] sm:$0xff] }
  0x11   :  { %29 = vst.msk [vmem:[%s477_s1 + $0x90] sm:$0x1] %vm22_vm0, %v205_v0  ;;  %30 = vst.msk [vmem:[%s477_s1 + $0xa8] sm:$0x1] %vm22_vm0, %v205_v0  ;;  %v78_v5 = vld [vmem:[#allocation2 + $0x28] sm:$0xff]  ;;  %v80_v7 = vld [vmem:[#allocation2 + $0x38] sm:$0xff] }
  0x12   :  { %31 = vst.msk [vmem:[%s477_s1 + $0x11] sm:$0x1] %vm22_vm0, %v205_v0  ;;  %32 = vst.msk [vmem:[%s477_s1 + $0x29] sm:$0x1] %vm22_vm0, %v205_v0  ;;  %v79_v8 = vld [vmem:[#allocation2 + $0x30] sm:$0xff]  ;;  %v82_v9 = vld [vmem:[#allocation2 + $0x48] sm:$0xff] }
  0x13   :  { %33 = vst.msk [vmem:[%s477_s1 + $0x41] sm:$0x1] %vm22_vm0, %v205_v0  ;;  %34 = vst.msk [vmem:[%s477_s1 + $0x59] sm:$0x1] %vm22_vm0, %v205_v0  ;;  %v81_v10 = vld [vmem:[#allocation2 + $0x40] sm:$0xff]  ;;  %v84_v11 = vld [vmem:[#allocation2 + $0x58] sm:$0xff] }
  0x14   :  { %35 = vst.msk [vmem:[%s477_s1 + $0x71] sm:$0x1] %vm22_vm0, %v205_v0  ;;  %36 = vst.msk [vmem:[%s477_s1 + $0x89] sm:$0x1] %vm22_vm0, %v205_v0  ;;  %111 = vrot.lane.b32.xlu1 %v76_v3, %s206_s0  ;;  %107 = vrot.lane.b32.xlu0 %v74_v4, %s206_s0  ;;  %v83_v12 = vld [vmem:[#allocation2 + $0x50] sm:$0xff]  ;;  %v86_v13 = vld [vmem:[#allocation2 + $0x68] sm:$0xff] }
  0x15   :  { %37 = vst.msk [vmem:[%s477_s1 + $0xa1] sm:$0x1] %vm22_vm0, %v205_v0  ;;  %38 = vst.msk [vmem:[%s477_s1 + $0xb9] sm:$0x1] %vm22_vm0, %v205_v0  ;;  %v85_v14 = vld [vmem:[#allocation2 + $0x60] sm:$0xff]  ;;  %v88_v15 = vld [vmem:[#allocation2 + $0x78] sm:$0xff] }
  0x16   :  { %42 = vst.msk [vmem:[%s477_s1 + $0x19] sm:$0xff] %vm39_vm1, %v205_v0  ;;  %40 = vst.msk [vmem:[%s477_s1 + $0x1] sm:$0xff] %vm39_vm1, %v205_v0  ;;  %v87_v16 = vld [vmem:[#allocation2 + $0x70] sm:$0xff]  ;;  %vm153_vm3 = vcmask 138248  }
  0x17   :  { %41 = vst.msk [vmem:[%s477_s1 + $0x9] sm:$0xff] %vm39_vm1, %v205_v0  ;;  %43 = vst.msk [vmem:[%s477_s1 + $0x21] sm:$0xff] %vm39_vm1, %v205_v0 }
  0x18   :  { %44 = vst.msk [vmem:[%s477_s1 + $0x31] sm:$0xff] %vm39_vm1, %v205_v0  ;;  %45 = vst.msk [vmem:[%s477_s1 + $0x39] sm:$0xff] %vm39_vm1, %v205_v0  ;;  %115 = vrot.lane.b32.xlu1 %v78_v5, %s206_s0  ;;  %113 = vrot.lane.b32.xlu0 %v77_v6, %s206_s0 }
  0x19   :  { %46 = vst.msk [vmem:[%s477_s1 + $0x49] sm:$0xff] %vm39_vm1, %v205_v0  ;;  %47 = vst.msk [vmem:[%s477_s1 + $0x51] sm:$0xff] %vm39_vm1, %v205_v0 }
  0x1a   :  { %48 = vst.msk [vmem:[%s477_s1 + $0x61] sm:$0xff] %vm39_vm1, %v205_v0  ;;  %49 = vst.msk [vmem:[%s477_s1 + $0x69] sm:$0xff] %vm39_vm1, %v205_v0 }
  0x1b   :  { %50 = vst.msk [vmem:[%s477_s1 + $0x79] sm:$0xff] %vm39_vm1, %v205_v0  ;;  %51 = vst.msk [vmem:[%s477_s1 + $0x81] sm:$0xff] %vm39_vm1, %v205_v0 }
  0x1c   :  { %52 = vst.msk [vmem:[%s477_s1 + $0x91] sm:$0xff] %vm39_vm1, %v205_v0  ;;  %53 = vst.msk [vmem:[%s477_s1 + $0x99] sm:$0xff] %vm39_vm1, %v205_v0  ;;  %119 = vrot.lane.b32.xlu1 %v80_v7, %s206_s0  ;;  %117 = vrot.lane.b32.xlu0 %v79_v8, %s206_s0 }
  0x1d   :  { %54 = vst.msk [vmem:[%s477_s1 + $0xa9] sm:$0xff] %vm39_vm1, %v205_v0  ;;  %55 = vst.msk [vmem:[%s477_s1 + $0xb1] sm:$0xff] %vm39_vm1, %v205_v0 }
  0x1e   :  { %59 = vst.msk [vmem:[%s477_s1 + $0x19] sm:$0xff] %vm56_vm2, %v205_v0  ;;  %57 = vst.msk [vmem:[%s477_s1 + $0x1] sm:$0xff] %vm56_vm2, %v205_v0 }
  0x1f   :  { %58 = vst.msk [vmem:[%s477_s1 + $0x9] sm:$0xff] %vm56_vm2, %v205_v0  ;;  %60 = vst.msk [vmem:[%s477_s1 + $0x21] sm:$0xff] %vm56_vm2, %v205_v0 }
  0x20   :  { %61 = vst.msk [vmem:[%s477_s1 + $0x31] sm:$0xff] %vm56_vm2, %v205_v0  ;;  %62 = vst.msk [vmem:[%s477_s1 + $0x39] sm:$0xff] %vm56_vm2, %v205_v0  ;;  %123 = vrot.lane.b32.xlu1 %v82_v9, %s206_s0  ;;  %121 = vrot.lane.b32.xlu0 %v81_v10, %s206_s0 }
  0x21   :  { %63 = vst.msk [vmem:[%s477_s1 + $0x49] sm:$0xff] %vm56_vm2, %v205_v0  ;;  %64 = vst.msk [vmem:[%s477_s1 + $0x51] sm:$0xff] %vm56_vm2, %v205_v0 }
  0x22   :  { %65 = vst.msk [vmem:[%s477_s1 + $0x61] sm:$0xff] %vm56_vm2, %v205_v0  ;;  %66 = vst.msk [vmem:[%s477_s1 + $0x69] sm:$0xff] %vm56_vm2, %v205_v0 }
  0x23   :  { %67 = vst.msk [vmem:[%s477_s1 + $0x79] sm:$0xff] %vm56_vm2, %v205_v0  ;;  %68 = vst.msk [vmem:[%s477_s1 + $0x81] sm:$0xff] %vm56_vm2, %v205_v0 }
  0x24   :  { %69 = vst.msk [vmem:[%s477_s1 + $0x91] sm:$0xff] %vm56_vm2, %v205_v0  ;;  %70 = vst.msk [vmem:[%s477_s1 + $0x99] sm:$0xff] %vm56_vm2, %v205_v0  ;;  %127 = vrot.lane.b32.xlu1 %v84_v11, %s206_s0  ;;  %125 = vrot.lane.b32.xlu0 %v83_v12, %s206_s0 }
  0x25   :  { %71 = vst.msk [vmem:[%s477_s1 + $0xa9] sm:$0xff] %vm56_vm2, %v205_v0  ;;  %72 = vst.msk [vmem:[%s477_s1 + $0xb1] sm:$0xff] %vm56_vm2, %v205_v0 }
  0x28   :  { %131 = vrot.lane.b32.xlu1 %v86_v13, %s206_s0  ;;  %129 = vrot.lane.b32.xlu0 %v85_v14, %s206_s0 }
  0x2c   :  { %135 = vrot.lane.b32.xlu1 %v88_v15, %s206_s0  ;;  %133 = vrot.lane.b32.xlu0 %v87_v16, %s206_s0 }
  0x82   :  { %v110_v17 = vpop.permute.xlu1 %109  ;;  %v106_v18 = vpop.permute.xlu0 %105 }
  0x83   :  { %156 = vst.msk [vmem:[%s477_s1 + $0x19] sm:$0xff] %vm153_vm3, %v110_v17  ;;  %154 = vst.msk [vmem:[%s477_s1 + $0x1] sm:$0xff] %vm153_vm3, %v106_v18 }
  0x86   :  { %v112_v19 = vpop.permute.xlu1 %111  ;;  %v108_v20 = vpop.permute.xlu0 %107 }
  0x87   :  { %157 = vst.msk [vmem:[%s477_s1 + $0x21] sm:$0xff] %vm153_vm3, %v112_v19  ;;  %155 = vst.msk [vmem:[%s477_s1 + $0x9] sm:$0xff] %vm153_vm3, %v108_v20 }
  0x8a   :  { %v116_v21 = vpop.permute.xlu1 %115  ;;  %v114_v22 = vpop.permute.xlu0 %113 }
  0x8b   :  { %159 = vst.msk [vmem:[%s477_s1 + $0x39] sm:$0xff] %vm153_vm3, %v116_v21  ;;  %158 = vst.msk [vmem:[%s477_s1 + $0x31] sm:$0xff] %vm153_vm3, %v114_v22 }
  0x8e   :  { %v120_v23 = vpop.permute.xlu1 %119  ;;  %v118_v24 = vpop.permute.xlu0 %117 }
  0x8f   :  { %161 = vst.msk [vmem:[%s477_s1 + $0x51] sm:$0xff] %vm153_vm3, %v120_v23  ;;  %160 = vst.msk [vmem:[%s477_s1 + $0x49] sm:$0xff] %vm153_vm3, %v118_v24 }
  0x92   :  { %v124_v25 = vpop.permute.xlu1 %123  ;;  %v122_v26 = vpop.permute.xlu0 %121 }
  0x93   :  { %163 = vst.msk [vmem:[%s477_s1 + $0x69] sm:$0xff] %vm153_vm3, %v124_v25  ;;  %162 = vst.msk [vmem:[%s477_s1 + $0x61] sm:$0xff] %vm153_vm3, %v122_v26 }
  0x96   :  { %v128_v27 = vpop.permute.xlu1 %127  ;;  %v126_v28 = vpop.permute.xlu0 %125 }
  0x97   :  { %165 = vst.msk [vmem:[%s477_s1 + $0x81] sm:$0xff] %vm153_vm3, %v128_v27  ;;  %164 = vst.msk [vmem:[%s477_s1 + $0x79] sm:$0xff] %vm153_vm3, %v126_v28 }
  0x9a   :  { %v132_v29 = vpop.permute.xlu1 %131  ;;  %v130_v30 = vpop.permute.xlu0 %129 }
  0x9b   :  { %167 = vst.msk [vmem:[%s477_s1 + $0x99] sm:$0xff] %vm153_vm3, %v132_v29  ;;  %166 = vst.msk [vmem:[%s477_s1 + $0x91] sm:$0xff] %vm153_vm3, %v130_v30 }
  0x9e   :  { %v136_v31 = vpop.permute.xlu1 %135  ;;  %v134_v32 = vpop.permute.xlu0 %133 }
  0x9f   :  { %169 = vst.msk [vmem:[%s477_s1 + $0xb1] sm:$0xff] %vm153_vm3, %v136_v31  ;;  %168 = vst.msk [vmem:[%s477_s1 + $0xa9] sm:$0xff] %vm153_vm3, %v134_v32 }
  0xa0   :  { %174 = vsyncpa [#allocation3], 1 }

</bundles_post_ra>
